<compile_context>
chip_gen: v7x
topology: tpu7x:2x2x1
jax: 0.10.0
libtpu: 0.0.40
codegen_flags: <defaults>
</compile_context>

<pallas_src>
import math

import jax
import jax.numpy as jnp
from jax.experimental import pallas as pl
from jax.experimental.pallas import tpu as pltpu


_TILE_BUDGET_BYTES = 2 << 20       # per x tile: amortizes ~0.35us/step overhead,
                                   # within v5e guidance, fine on v6e/v7x
_PARAM_RESIDENT_BYTES = 512 << 10  # hold scale/shift fully in VMEM below this
_SUBLANE_UNIT = {4: 8, 2: 16, 1: 32}   # itemsize -> rows per packed vreg
_LANE_UNIT = 128


# ----------------------------- tiling helpers --------------------------------


def _largest_aligned_divisor(n, unit, cap):
    best = None
    for d in range(unit, min(n, cap) + 1, unit):
        if n % d == 0:
            best = d
    return best


def _pick_tile(dim, unit, cap):
    """Tile along one axis: the full dim if it fits the byte budget, else the
    largest unit-aligned divisor, else a fixed unit-aligned tile (the cdiv grid
    masks the ragged last block)."""
    cap = max(cap, unit)
    if dim <= cap:
        return dim                          # full-dim block is always legal
    d = _largest_aligned_divisor(dim, unit, cap)
    return d if d is not None else (cap // unit) * unit


# ----------------------------- kernel -----------------------------------------


def _make_kernel(param_mode, TR, TS, row_axis, lane_axis):
    def kernel(x_ref, s_ref, t_ref, o_ref):
        x = x_ref[...].astype(jnp.float32)
        if param_mode == "resident_rows":
            # scale/shift are fully resident (R,1); slice this tile's rows.
            r0 = pl.multiple_of(pl.program_id(row_axis) * TR, TR)
            s = s_ref[pl.ds(r0, TR), :]
            t = t_ref[pl.ds(r0, TR), :]
        elif param_mode == "resident_lanes":
            # scale/shift are fully resident (1,S); slice this tile's lanes.
            c0 = pl.multiple_of(pl.program_id(lane_axis) * TS, TS)
            s = s_ref[:, pl.ds(c0, TS)]
            t = t_ref[:, pl.ds(c0, TS)]
        else:  # "tiled": block already matches the x tile's broadcast shape.
            s = s_ref[...]
            t = t_ref[...]
        y = x * s.astype(jnp.float32) + t.astype(jnp.float32)
        o_ref[...] = y.astype(o_ref.dtype)

    return kernel


# ----------------------------- 2D modulate ------------------------------------


def _ssf_modulate_2d(x2d, s2d, t2d):
    """y = x2d * s2d + t2d, with s2d/t2d of shape (R,1) or (1,S)."""
    R, S = x2d.shape
    itemsize = x2d.dtype.itemsize
    unit_r = _SUBLANE_UNIT.get(itemsize, 8)

    TS = _pick_tile(S, _LANE_UNIT,
                    max(_LANE_UNIT, _TILE_BUDGET_BYTES // (unit_r * itemsize)))
    TR = _pick_tile(R, unit_r,
                    max(unit_r, _TILE_BUDGET_BYTES // (TS * itemsize)))
    gr, gs = pl.cdiv(R, TR), pl.cdiv(S, TS)

    # Larger-block-count axis first so v7x's two TensorCores both get blocks.
    rows_first = gr >= gs
    if rows_first:
        grid = (gr, gs)
        x_map = lambda i, j: (i, j)
        row_axis, lane_axis = 0, 1
    else:
        grid = (gs, gr)
        x_map = lambda j, i: (i, j)
        row_axis, lane_axis = 1, 0

    x_spec = pl.BlockSpec((TR, TS), x_map)

    p_bytes = s2d.size * s2d.dtype.itemsize
    if s2d.shape == (R, 1):
        if gr > 1 and R % TR == 0 and p_bytes <= _PARAM_RESIDENT_BYTES:
            param_mode = "resident_rows"
            p_spec = pl.BlockSpec((R, 1), lambda a, b: (0, 0))
        else:
            param_mode = "tiled"
            p_spec = pl.BlockSpec(
                (TR, 1),
                (lambda i, j: (i, 0)) if rows_first else (lambda j, i: (i, 0)))
    elif s2d.shape == (1, S):
        if gs > 1 and S % TS == 0 and p_bytes <= _PARAM_RESIDENT_BYTES:
            param_mode = "resident_lanes"
            p_spec = pl.BlockSpec((1, S), lambda a, b: (0, 0))
        else:
            param_mode = "tiled"
            p_spec = pl.BlockSpec(
                (1, TS),
                (lambda i, j: (0, j)) if rows_first else (lambda j, i: (0, j)))
    else:
        raise ValueError(f"unsupported param shape {s2d.shape}")

    kernel = _make_kernel(param_mode, TR, TS, row_axis, lane_axis)

    return pl.pallas_call(
        kernel,
        out_shape=jax.ShapeDtypeStruct((R, S), x2d.dtype),
        grid=grid,
        in_specs=[x_spec, p_spec, p_spec],
        out_specs=pl.BlockSpec((TR, TS), x_map),
        compiler_params=pltpu.CompilerParams(
            dimension_semantics=("parallel", "parallel"),
            vmem_limit_bytes=32 << 20,
        ),
    )(x2d, s2d, t2d)


# ----------------------------- forward ----------------------------------------


def ssf_ada_forward(x, ssf_scale, ssf_shift):
    """Pallas implementation of SSFAda.forward."""
    dim = ssf_scale.shape[0]
    scale = jnp.asarray(ssf_scale)
    shift = jnp.asarray(ssf_shift)

    if x.shape[-1] == dim:
        # Channel-last branch: broadcast over the last dim.
        lead = int(math.prod(x.shape[:-1]))
        if dim % _LANE_UNIT != 0:
            # Fold leading rows into the lane dim so stores stay lane-dense.
            f = _LANE_UNIT // math.gcd(dim, _LANE_UNIT)
            if f > 1 and lead % f == 0:
                x2d = x.reshape(lead // f, f * dim)
                y2d = _ssf_modulate_2d(
                    x2d,
                    jnp.tile(scale, f).reshape(1, f * dim),
                    jnp.tile(shift, f).reshape(1, f * dim))
                return y2d.reshape(x.shape)
        x2d = x.reshape(lead, dim)
        y2d = _ssf_modulate_2d(x2d, scale.reshape(1, dim), shift.reshape(1, dim))
        return y2d.reshape(x.shape)

    if x.ndim >= 2 and x.shape[1] == dim:
        # NCHW branch: per-channel scale/shift.
        B, C = int(x.shape[0]), int(x.shape[1])
        spatial = int(math.prod(x.shape[2:])) if x.ndim > 2 else 1
        if spatial % _LANE_UNIT == 0:
            # (B*C, H*W): lane-dense columns, tiny per-row params.
            x2d = x.reshape(B * C, spatial)
            s2d = jnp.broadcast_to(scale[None, :], (B, C)).reshape(B * C, 1)
            t2d = jnp.broadcast_to(shift[None, :], (B, C)).reshape(B * C, 1)
        else:
            # Small / unaligned H*W (e.g. 7x7, 14x14): fold C into the lane dim
            # and expand the params per-lane so stores stay dense.
            x2d = x.reshape(B, C * spatial)
            s2d = jnp.repeat(scale, spatial).reshape(1, C * spatial)
            t2d = jnp.repeat(shift, spatial).reshape(1, C * spatial)
        return _ssf_modulate_2d(x2d, s2d, t2d).reshape(x.shape)

    raise ValueError(
        "the input tensor shape does not match the shape of the scale factor.")


# --------------------------------- main ---------------------------------------


if __name__ == "__main__":
    key = jax.random.PRNGKey(0)
    k_x, k_s, k_t, k_x2, k_x3, k_x4 = jax.random.split(key, 6)

    # NCHW input: dim == channels (and channels != W), so the x.shape[1] branch fires.
    B, C, H, W = 2, 4, 16, 16
    dim = C
    x = jax.random.normal(k_x, (B, C, H, W), jnp.float32)

    # Parameter init per the module: scale ~ N(1, 0.02), shift ~ N(0, 0.02).
    ssf_scale = 1.0 + 0.02 * jax.random.normal(k_s, (dim,), jnp.float32)
    ssf_shift = 0.02 * jax.random.normal(k_t, (dim,), jnp.float32)

    # 1) NCHW, aligned spatial (H*W = 256 -> (B*C, H*W) fold).
    y = jax.block_until_ready(ssf_ada_forward(x, ssf_scale, ssf_shift))
    y_ref = x * ssf_scale[None, :, None, None] + ssf_shift[None, :, None, None]
    assert y.shape == x.shape
    assert jnp.allclose(y, y_ref, atol=1e-6, rtol=1e-6), "NCHW aligned mismatch"

    # 2) NCHW, unaligned spatial (7x7 -> (B, C*H*W) lane-expanded fold).
    x3 = jax.random.normal(k_x3, (B, C, 7, 7), jnp.float32)
    y3 = jax.block_until_ready(ssf_ada_forward(x3, ssf_scale, ssf_shift))
    y3_ref = x3 * ssf_scale[None, :, None, None] + ssf_shift[None, :, None, None]
    assert jnp.allclose(y3, y3_ref, atol=1e-6, rtol=1e-6), "NCHW unaligned mismatch"

    # 3) Channel-last branch (x.shape[-1] == dim).
    x2 = jax.random.normal(k_x2, (2, 8, dim), jnp.float32)
    y2 = jax.block_until_ready(ssf_ada_forward(x2, ssf_scale, ssf_shift))
    y2_ref = x2 * ssf_scale + ssf_shift
    assert jnp.allclose(y2, y2_ref, atol=1e-6, rtol=1e-6), "channel-last mismatch"

    # 4) Channel-last with a lane-dense lead->lane fold (lead divisible by 128/gcd).
    x4 = jax.random.normal(k_x4, (4, 8, dim), jnp.float32)
    y4 = jax.block_until_ready(ssf_ada_forward(x4, ssf_scale, ssf_shift))
    y4_ref = x4 * ssf_scale + ssf_shift
    assert jnp.allclose(y4, y4_ref, atol=1e-6, rtol=1e-6), "channel-last fold mismatch"

    print("KERNEL_OK")
</pallas_src>

<mosaic_0001>
module attributes {stable_mosaic.version = 11 : i64} {
  func.func @kernel(%arg0: i32, %arg1: i32, %arg2: memref<8x256xf32, #tpu.memory_space<vmem>>, %arg3: memref<8x1xf32, #tpu.memory_space<vmem>>, %arg4: memref<8x1xf32, #tpu.memory_space<vmem>>, %arg5: memref<8x256xf32, #tpu.memory_space<vmem>>) attributes {dimension_semantics = [#tpu.dimension_semantics<parallel>, #tpu.dimension_semantics<parallel>], iteration_bounds = array<i64: 1, 1>, scalar_prefetch = 0 : i64, scratch_operands = 0 : i64, tpu.core_type = #tpu.core_type<tc>, window_params = [{transform_indices = @transform_0, window_bounds = array<i64: 8, 256>}, {transform_indices = @transform_1, window_bounds = array<i64: 8, 1>}, {transform_indices = @transform_2, window_bounds = array<i64: 8, 1>}, {transform_indices = @transform_3, window_bounds = array<i64: 8, 256>}]} {
    %c0 = arith.constant 0 : index
    %c0_0 = arith.constant 0 : index
    %0 = vector.load %arg2[%c0, %c0_0] : memref<8x256xf32, #tpu.memory_space<vmem>>, vector<8x256xf32>
    %c0_1 = arith.constant 0 : index
    %c0_2 = arith.constant 0 : index
    %1 = vector.load %arg3[%c0_1, %c0_2] : memref<8x1xf32, #tpu.memory_space<vmem>>, vector<8x1xf32>
    %c0_3 = arith.constant 0 : index
    %c0_4 = arith.constant 0 : index
    %2 = vector.load %arg4[%c0_3, %c0_4] : memref<8x1xf32, #tpu.memory_space<vmem>>, vector<8x1xf32>
    %3 = vector.broadcast %1 : vector<8x1xf32> to vector<8x256xf32>
    %4 = arith.mulf %0, %3 : vector<8x256xf32>
    %5 = vector.broadcast %2 : vector<8x1xf32> to vector<8x256xf32>
    %6 = arith.addf %4, %5 : vector<8x256xf32>
    %c0_5 = arith.constant 0 : index
    %c0_6 = arith.constant 0 : index
    %7 = vector.load %arg5[%c0_5, %c0_6] : memref<8x256xf32, #tpu.memory_space<vmem>>, vector<8x256xf32>
    tpu.vector_store %arg5[%c0_5, %c0_6], %6 {strides = array<i32>} : memref<8x256xf32, #tpu.memory_space<vmem>>, vector<8x256xf32>,
    return
  }
  func.func @transform_0(%arg0: i32, %arg1: i32) -> (i32, i32) {
    %c0_i32 = arith.constant 0 : i32
    return %arg0, %arg1 : i32, i32
  }
  func.func @transform_1(%arg0: i32, %arg1: i32) -> (i32, i32) {
    %c0_i32 = arith.constant 0 : i32
    %c0_i32_0 = arith.constant 0 : i32
    return %arg0, %c0_i32 : i32, i32
  }
  func.func @transform_2(%arg0: i32, %arg1: i32) -> (i32, i32) {
    %c0_i32 = arith.constant 0 : i32
    %c0_i32_0 = arith.constant 0 : i32
    return %arg0, %c0_i32 : i32, i32
  }
  func.func @transform_3(%arg0: i32, %arg1: i32) -> (i32, i32) {
    %c0_i32 = arith.constant 0 : i32
    return %arg0, %arg1 : i32, i32
  }
}

</mosaic_0001>

<bundles_post_ra>
// kernel: tpu_custom_call.1
= control target key start
LH: loop header
LB: loop body
LE: loop exit
PB: predicated region body
PF: predicated region fallthrough
CT: control target
= control target key end

     0   :  { %s122_s0 = inlined_call_operand.vmem [shape: f32[8,256], index: 0, kind: input, shape index: {}]   ;;  %s123_s1 = inlined_call_operand.vmem [shape: f32[8,1], index: 1, kind: input, shape index: {}]   ;;  %s124_s2 = inlined_call_operand.vmem [shape: f32[8,1], index: 2, kind: input, shape index: {}]   ;;  %s125_s3 = inlined_call_operand.hbm [shape: f32[8,256], index: 3, kind: output, shape index: {}]  }
   0x1   :  { %v17_v0 = vld [vmem:[%s123_s1] sm:$0xff] }
   0x2   :  { %8 = vsyncpa [#allocation3], 0  ;;  %v76_v1 = vmov 0   ;;  %v18_v2 = vld [vmem:[%s124_s2] sm:$0xff]  ;;  %v16_v5 = vld [vmem:[%s122_s0 + $0x8] sm:$0xff]  ;;  %s77_s20 = smov [#allocation2]  }
   0x3   :  { %51 = vset.pattern.permute.xlu0 %v76_v1  ;;  %v15_v4 = vld [vmem:[%s122_s0] sm:$0xff]  ;;  %s41_s1 = sshll.u32 %s77_s20, 4  ;;  %s42_s1 = int_to_ptr.vmem [resolvable:$true] %s41_s1 }
   0x4   :  { %21 = vperm.xlu0 %51, %v17_v0   ;;  %s52_s2 = scalar_lea.vmem %s42_s1, 256  ;;  %p57_p1 = scmp.lt.s32.totalorder %s42_s1, %s42_s1 }
   0x5   :  { %p53_p0 = scmp.ne.s32.totalorder %s42_s1, %s52_s2  ;;  %p58_p2 = scmp.lt.s32.totalorder %s52_s2, %s52_s2 }
   0x7   :  { %p59_p3 = por %p58_p2, %p57_p1 }
   0x8   :  { %28 = vperm.xlu0 %51, %v18_v2  }
   0x9   :  { %p60_p4 = pnand %p59_p3, %p53_p0 }
  0x83   :  { %v22_v3 = vpop.permute.xlu0 %21 }
  0x84   :  { %v24_v6 = vmul.f32 %v22_v3, %v15_v4  ;;  %v25_v7 = vmul.f32 %v22_v3, %v16_v5 }
  0x87   :  { %v29_v8 = vpop.permute.xlu0 %28 }
  0x88   :  { %v31_v9 = vadd.f32 %v29_v8, %v24_v6  ;;  %v32_v10 = vadd.f32 %v29_v8, %v25_v7 }
  0x8a   :  { %33 = vst [vmem:[#allocation2] sm:$0xff] %v31_v9  ;;  %34 = vst [vmem:[#allocation2 + $0x8] sm:$0xff] %v32_v10 }
  0x8b   :  { %63 = shalt.err (!%p60_p4)
}
  0x8c   :  { %s64_s0 = scalar_lea.hbm %s125_s3, 256 }
  0x8d   :  { %p65_p5 = scmp.ne.s32.totalorder %s125_s3, %s64_s0  ;;  %p68_p6 = scmp.lt.u32.totalorder %s64_s0, %s125_s3 }
  0x8f   :  { %p70_p7 = pnand %p68_p6, %p65_p5 }
  0x91   :  { %73 = shalt.err (!%p70_p7)
}
  0x92   :  { %44 = dma.vmem_to_hbm [thread:$0]  %s42_s1, 256, %s125_s3, [#allocation3]  }
  0x93   :  { %74 = dma.done.wait [#allocation3], 256  }
  0x94   :  { %75 = vsyncadd [#allocation3], 4294967040 }
  0x95   :  { %48 = vsyncpa [#allocation3], 1 }

</bundles_post_ra>
